<compile_context>
chip_gen: v7x
topology: tpu7x:2x2x1
jax: 0.10.0
libtpu: 0.0.40
codegen_flags: <defaults>
</compile_context>

<pallas_src>
import jax
import jax.numpy as jnp
import numpy as np
from jax.experimental import pallas as pl
from jax.experimental.pallas import tpu as pltpu

_LANE = 128


def _round_up(x, m):
    return (x + m - 1) // m * m


def _mlp_kernel(x_ref, w1_ref, b1_ref, w2_ref, b2_ref, w3_ref, b3_ref, o_ref):
    # bf16 MXU operands, f32 accumulation, f32 elementwise (EUP sigmoid).
    x = x_ref[...].astype(jnp.bfloat16)

    h1 = jnp.dot(x, w1_ref[...], preferred_element_type=jnp.float32) + b1_ref[...]
    h1 = jnp.maximum(h1, 0.0)

    h2 = jnp.dot(h1.astype(jnp.bfloat16), w2_ref[...],
                 preferred_element_type=jnp.float32) + b2_ref[...]
    h2 = jnp.maximum(h2, 0.0)

    z = jnp.dot(h2.astype(jnp.bfloat16), w3_ref[...],
                preferred_element_type=jnp.float32) + b3_ref[...]
    o_ref[...] = jax.nn.sigmoid(z).astype(o_ref.dtype)


def prepare_params(params):
    """Pad + cast weights/biases ONCE (hoisted out of the per-call path).

    Weights -> bf16, zero-padded so hidden widths are 128 lanes.  fc3 is only
    row-padded: its output width stays d_out so the kernel writes unpadded
    rows straight to HBM.  Biases stay f32.
    """
    w1, b1, w2, b2, w3, b3 = params
    d_in, h1_dim = w1.shape
    h2_dim, d_out = w2.shape[1], w3.shape[1]
    h1_p = _round_up(h1_dim, _LANE)
    h2_p = _round_up(h2_dim, _LANE)

    def pad_w(w, rows, cols):
        r, c = w.shape
        return jnp.pad(w.astype(jnp.bfloat16), ((0, rows - r), (0, cols - c)))

    def pad_b(b, cols):
        b = b.reshape(1, -1).astype(jnp.float32)
        return jnp.pad(b, ((0, 0), (0, cols - b.shape[1])))

    return (pad_w(w1, d_in, h1_p), pad_b(b1, h1_p),
            pad_w(w2, h1_p, h2_p), pad_b(b2, h2_p),
            pad_w(w3, h2_p, d_out), pad_b(b3, d_out))


def speaker_segmentation_forward(x, prepared_params, *, tm=2048,
                                 out_dtype=jnp.float32):
    """x: (B, h, w) (or any (B, ...) with prod(trailing dims) == in_features).

    prepared_params: output of prepare_params().  Returns (B, o0*o1*o2) in
    out_dtype (flat, like the PyTorch module).  tm should be a multiple of 8
    (or >= B); default 2048 is safe under v5e's 16 MiB default scoped VMEM.
    """
    w1p, b1p, w2p, b2p, w3p, b3p = prepared_params
    B = x.shape[0]
    d_in, h1_p = w1p.shape
    h2_p, d_out = w3p.shape

    x_flat = x.reshape(B, -1)          # no dtype cast here (cast in-kernel)
    assert x_flat.shape[1] == d_in, (x_flat.shape, d_in)

    # Batch tiling: full-array block for small B (block == array dim is always
    # legal), otherwise `tm`-row tiles.  The last, possibly partial, tile is
    # handled by Pallas (OOB writes dropped); rows are independent so garbage
    # padding rows cannot contaminate valid rows.
    tm = B if B <= tm else tm
    grid = (pl.cdiv(B, tm),)

    def resident(shape):
        # Constant index_map -> VMEM-resident across grid steps.
        # TODO(synk): on v7x, pipeline_mode=pl.Buffered(1) here would single-
        # buffer these constant operands and free ~300 KiB of VMEM headroom.
        return pl.BlockSpec(shape, lambda i: (0, 0))

    flops = 2 * B * (d_in * h1_p + h1_p * h2_p + h2_p * d_out)
    weight_bytes = 2 * (d_in * h1_p + h1_p * h2_p + h2_p * d_out) \
        + 4 * (h1_p + h2_p + d_out)
    bytes_accessed = (x_flat.size * x_flat.dtype.itemsize
                      + B * d_out * np.dtype(out_dtype).itemsize
                      + weight_bytes)

    return pl.pallas_call(
        _mlp_kernel,
        out_shape=jax.ShapeDtypeStruct((B, d_out), out_dtype),
        grid=grid,
        in_specs=[
            pl.BlockSpec((tm, d_in), lambda i: (i, 0)),   # x tile (pipelined)
            resident((d_in, h1_p)),
            resident((1, h1_p)),
            resident((h1_p, h2_p)),
            resident((1, h2_p)),
            resident((h2_p, d_out)),
            resident((1, d_out)),
        ],
        # Unpadded output block: last dim == full array dim -> legal; masked
        # 64-lane stores are hidden under DMA in this memory-bound kernel.
        out_specs=pl.BlockSpec((tm, d_out), lambda i: (i, 0)),
        compiler_params=pltpu.CompilerParams(
            dimension_semantics=("parallel",)),
        cost_estimate=pl.CostEstimate(
            flops=flops,
            transcendentals=B * d_out,
            bytes_accessed=bytes_accessed),
    )(x_flat, w1p, b1p, w2p, b2p, w3p, b3p)


def init_params(input_dim, output_dim, key):
    """Synthetic nn.Linear-style init.  Weights stored (in, out); biases (1, out)."""
    h, w = input_dim
    d_in = h * w
    o0, o1, o2 = output_dim
    d_out = o0 * o1 * o2

    dims = [(d_in, 32), (32, 64), (64, d_out)]
    params = []
    for fan_in, fan_out in dims:
        key, kw, kb = jax.random.split(key, 3)
        bound = 1.0 / np.sqrt(fan_in)
        W = jax.random.uniform(kw, (fan_in, fan_out), jnp.float32, -bound, bound)
        b = jax.random.uniform(kb, (1, fan_out), jnp.float32, -bound, bound)
        params.extend([W, b])
    return tuple(params)


def reference_forward(x, params, matmul_dtype=jnp.float32):
    """Pure-JAX reference.  matmul_dtype=bf16 matches the kernel's MXU precision."""
    w1, b1, w2, b2, w3, b3 = params
    B = x.shape[0]

    def dense(a, w, b):
        return jnp.dot(a.astype(matmul_dtype), w.astype(matmul_dtype),
                       preferred_element_type=jnp.float32) \
            + b.reshape(1, -1).astype(jnp.float32)

    h = x.reshape(B, -1)
    h = jnp.maximum(dense(h, w1, b1), 0.0)
    h = jnp.maximum(dense(h, w2, b2), 0.0)
    return jax.nn.sigmoid(dense(h, w3, b3))


if __name__ == "__main__":
    input_dim = (16, 16)      # -> 256 input features
    output_dim = (2, 4, 8)    # -> 64 outputs
    batch = 2

    key = jax.random.PRNGKey(0)
    key, kx = jax.random.split(key)
    x = jax.random.normal(kx, (batch,) + input_dim, jnp.float32)
    params = init_params(input_dim, output_dim, key)
    prepared = prepare_params(params)      # pad/cast once, reused every call

    out = jax.block_until_ready(speaker_segmentation_forward(x, prepared))
    assert out.shape == (batch, output_dim[0] * output_dim[1] * output_dim[2])
    assert out.dtype == jnp.float32

    # Matched-precision check (bf16 MXU operands) -> tight tolerance.
    ref_bf16 = reference_forward(x, params, jnp.bfloat16)
    np.testing.assert_allclose(np.asarray(out), np.asarray(ref_bf16),
                               rtol=1e-5, atol=1e-5)
    # Full-f32 PyTorch-semantics check -> loose tolerance (bf16 matmul error).
    ref_f32 = reference_forward(x, params, jnp.float32)
    np.testing.assert_allclose(np.asarray(out), np.asarray(ref_f32),
                               rtol=2e-2, atol=2e-2)

    # Exercise the tiled / non-divisible-batch path with a small grid
    # (grid=3, last tile partial).
    key, kx2 = jax.random.split(key)
    x2 = jax.random.normal(kx2, (20,) + input_dim, jnp.float32)
    out2 = jax.block_until_ready(
        speaker_segmentation_forward(x2, prepared, tm=8))
    ref2 = reference_forward(x2, params, jnp.bfloat16)
    np.testing.assert_allclose(np.asarray(out2), np.asarray(ref2),
                               rtol=1e-5, atol=1e-5)

    print("KERNEL_OK")
</pallas_src>

<mosaic_0001>
module attributes {stable_mosaic.version = 11 : i64} {
  func.func @_mlp_kernel(%arg0: i32, %arg1: memref<2x256xf32, #tpu.memory_space<vmem>>, %arg2: memref<256x128xbf16, #tpu.memory_space<vmem>>, %arg3: memref<1x128xf32, #tpu.memory_space<vmem>>, %arg4: memref<128x128xbf16, #tpu.memory_space<vmem>>, %arg5: memref<1x128xf32, #tpu.memory_space<vmem>>, %arg6: memref<128x64xbf16, #tpu.memory_space<vmem>>, %arg7: memref<1x64xf32, #tpu.memory_space<vmem>>, %arg8: memref<2x64xf32, #tpu.memory_space<vmem>>) attributes {dimension_semantics = [#tpu.dimension_semantics<parallel>], iteration_bounds = array<i64: 1>, scalar_prefetch = 0 : i64, scratch_operands = 0 : i64, tpu.core_type = #tpu.core_type<tc>, window_params = [{transform_indices = @transform_0, window_bounds = array<i64: 2, 256>}, {pipeline_mode = #tpu.pipeline_mode<synchronous>, transform_indices = @transform_1, window_bounds = array<i64: 256, 128>}, {pipeline_mode = #tpu.pipeline_mode<synchronous>, transform_indices = @transform_2, window_bounds = array<i64: 1, 128>}, {pipeline_mode = #tpu.pipeline_mode<synchronous>, transform_indices = @transform_3, window_bounds = array<i64: 128, 128>}, {pipeline_mode = #tpu.pipeline_mode<synchronous>, transform_indices = @transform_4, window_bounds = array<i64: 1, 128>}, {pipeline_mode = #tpu.pipeline_mode<synchronous>, transform_indices = @transform_5, window_bounds = array<i64: 128, 64>}, {pipeline_mode = #tpu.pipeline_mode<synchronous>, transform_indices = @transform_6, window_bounds = array<i64: 1, 64>}, {transform_indices = @transform_7, window_bounds = array<i64: 2, 64>}]} {
    %c0 = arith.constant 0 : index
    %c0_0 = arith.constant 0 : index
    %0 = vector.load %arg1[%c0, %c0_0] : memref<2x256xf32, #tpu.memory_space<vmem>>, vector<2x256xf32>
    %1 = arith.truncf %0 : vector<2x256xf32> to vector<2x256xbf16>
    %c0_1 = arith.constant 0 : index
    %c0_2 = arith.constant 0 : index
    %2 = vector.load %arg2[%c0_1, %c0_2] : memref<256x128xbf16, #tpu.memory_space<vmem>>, vector<256x128xbf16>
    %cst = arith.constant dense<0.000000e+00> : vector<2x128xf32>
    %3 = tpu.matmul %1, %2, %cst {dimension_numbers = #tpu.dot_dimension_numbers<[1], [0], [0], [1], [0, 0, 1, 1], [], []>} : vector<2x256xbf16>, vector<256x128xbf16>, vector<2x128xf32> -> vector<2x128xf32>
    %c0_3 = arith.constant 0 : index
    %c0_4 = arith.constant 0 : index
    %4 = vector.load %arg3[%c0_3, %c0_4] : memref<1x128xf32, #tpu.memory_space<vmem>>, vector<1x128xf32>
    %5 = vector.broadcast %4 : vector<1x128xf32> to vector<2x128xf32>
    %6 = arith.addf %3, %5 : vector<2x128xf32>
    %cst_5 = arith.constant 0.000000e+00 : f32
    %7 = vector.broadcast %cst_5 : f32 to vector<2x128xf32>
    %8 = arith.maximumf %6, %7 : vector<2x128xf32>
    %9 = arith.truncf %8 : vector<2x128xf32> to vector<2x128xbf16>
    %c0_6 = arith.constant 0 : index
    %c0_7 = arith.constant 0 : index
    %10 = vector.load %arg4[%c0_6, %c0_7] : memref<128x128xbf16, #tpu.memory_space<vmem>>, vector<128x128xbf16>
    %cst_8 = arith.constant dense<0.000000e+00> : vector<2x128xf32>
    %11 = tpu.matmul %9, %10, %cst_8 {dimension_numbers = #tpu.dot_dimension_numbers<[1], [0], [0], [1], [0, 0, 1, 1], [], []>} : vector<2x128xbf16>, vector<128x128xbf16>, vector<2x128xf32> -> vector<2x128xf32>
    %c0_9 = arith.constant 0 : index
    %c0_10 = arith.constant 0 : index
    %12 = vector.load %arg5[%c0_9, %c0_10] : memref<1x128xf32, #tpu.memory_space<vmem>>, vector<1x128xf32>
    %13 = vector.broadcast %12 : vector<1x128xf32> to vector<2x128xf32>
    %14 = arith.addf %11, %13 : vector<2x128xf32>
    %cst_11 = arith.constant 0.000000e+00 : f32
    %15 = vector.broadcast %cst_11 : f32 to vector<2x128xf32>
    %16 = arith.maximumf %14, %15 : vector<2x128xf32>
    %17 = arith.truncf %16 : vector<2x128xf32> to vector<2x128xbf16>
    %c0_12 = arith.constant 0 : index
    %c0_13 = arith.constant 0 : index
    %18 = vector.load %arg6[%c0_12, %c0_13] : memref<128x64xbf16, #tpu.memory_space<vmem>>, vector<128x64xbf16>
    %cst_14 = arith.constant dense<0.000000e+00> : vector<2x64xf32>
    %19 = tpu.matmul %17, %18, %cst_14 {dimension_numbers = #tpu.dot_dimension_numbers<[1], [0], [0], [1], [0, 0, 1, 1], [], []>} : vector<2x128xbf16>, vector<128x64xbf16>, vector<2x64xf32> -> vector<2x64xf32>
    %c0_15 = arith.constant 0 : index
    %c0_16 = arith.constant 0 : index
    %20 = vector.load %arg7[%c0_15, %c0_16] : memref<1x64xf32, #tpu.memory_space<vmem>>, vector<1x64xf32>
    %21 = vector.broadcast %20 : vector<1x64xf32> to vector<2x64xf32>
    %22 = arith.addf %19, %21 : vector<2x64xf32>
    %23 = arith.negf %22 : vector<2x64xf32>
    %24 = math.exp %23 : vector<2x64xf32>
    %cst_17 = arith.constant 1.000000e+00 : f32
    %25 = vector.broadcast %cst_17 : f32 to vector<2x64xf32>
    %26 = arith.addf %25, %24 : vector<2x64xf32>
    %27 = arith.divf %25, %26 : vector<2x64xf32>
    %c0_18 = arith.constant 0 : index
    %c0_19 = arith.constant 0 : index
    %28 = vector.load %arg8[%c0_18, %c0_19] : memref<2x64xf32, #tpu.memory_space<vmem>>, vector<2x64xf32>
    tpu.vector_store %arg8[%c0_18, %c0_19], %27 {strides = array<i32>} : memref<2x64xf32, #tpu.memory_space<vmem>>, vector<2x64xf32>,
    return
  }
  func.func @transform_0(%arg0: i32) -> (i32, i32) {
    %c0_i32 = arith.constant 0 : i32
    %c0_i32_0 = arith.constant 0 : i32
    return %arg0, %c0_i32 : i32, i32
  }
  func.func @transform_1(%arg0: i32) -> (i32, i32) {
    %c0_i32 = arith.constant 0 : i32
    %c0_i32_0 = arith.constant 0 : i32
    %c0_i32_1 = arith.constant 0 : i32
    return %c0_i32, %c0_i32_0 : i32, i32
  }
  func.func @transform_2(%arg0: i32) -> (i32, i32) {
    %c0_i32 = arith.constant 0 : i32
    %c0_i32_0 = arith.constant 0 : i32
    %c0_i32_1 = arith.constant 0 : i32
    return %c0_i32, %c0_i32_0 : i32, i32
  }
  func.func @transform_3(%arg0: i32) -> (i32, i32) {
    %c0_i32 = arith.constant 0 : i32
    %c0_i32_0 = arith.constant 0 : i32
    %c0_i32_1 = arith.constant 0 : i32
    return %c0_i32, %c0_i32_0 : i32, i32
  }
  func.func @transform_4(%arg0: i32) -> (i32, i32) {
    %c0_i32 = arith.constant 0 : i32
    %c0_i32_0 = arith.constant 0 : i32
    %c0_i32_1 = arith.constant 0 : i32
    return %c0_i32, %c0_i32_0 : i32, i32
  }
  func.func @transform_5(%arg0: i32) -> (i32, i32) {
    %c0_i32 = arith.constant 0 : i32
    %c0_i32_0 = arith.constant 0 : i32
    %c0_i32_1 = arith.constant 0 : i32
    return %c0_i32, %c0_i32_0 : i32, i32
  }
  func.func @transform_6(%arg0: i32) -> (i32, i32) {
    %c0_i32 = arith.constant 0 : i32
    %c0_i32_0 = arith.constant 0 : i32
    %c0_i32_1 = arith.constant 0 : i32
    return %c0_i32, %c0_i32_0 : i32, i32
  }
  func.func @transform_7(%arg0: i32) -> (i32, i32) {
    %c0_i32 = arith.constant 0 : i32
    %c0_i32_0 = arith.constant 0 : i32
    return %arg0, %c0_i32 : i32, i32
  }
}

</mosaic_0001>

<bundles_post_ra>
// kernel: tpu_custom_call.1
= control target key start
LH: loop header
LB: loop body
LE: loop exit
PB: predicated region body
PF: predicated region fallthrough
CT: control target
= control target key end

     0   :  { %12 = vsyncpa [#allocation3], 0  ;;  %s835_s0 = inlined_call_operand.vmem [shape: f32[2,256], index: 0, kind: input, shape index: {}]   ;;  %s836_s1 = inlined_call_operand.hbm [shape: bf16[256,128], index: 1, kind: input, shape index: {}]   ;;  %s837_s2 = inlined_call_operand.vmem [shape: f32[1,128], index: 2, kind: input, shape index: {}]   ;;  %s838_s3 = inlined_call_operand.vmem [shape: bf16[128,128], index: 3, kind: input, shape index: {}]   ;;  %s839_s4 = inlined_call_operand.vmem [shape: f32[1,128], index: 4, kind: input, shape index: {}]   ;;  %s840_s5 = inlined_call_operand.vmem [shape: bf16[128,64], index: 5, kind: input, shape index: {}]   ;;  %s841_s6 = inlined_call_operand.vmem [shape: f32[1,64], index: 6, kind: input, shape index: {}]   ;;  %s842_s7 = inlined_call_operand.hbm [shape: f32[2,64], index: 7, kind: output, shape index: {}]  }
   0x1   :  { %13 = vsyncpa [#allocation4], 0  ;;  %s687_s24 = smov [#allocation2]   ;;  %s639_s28 = scalar_lea.hbm %s836_s1, 2048 }
   0x2   :  { %s21_s25 = sshll.u32 %s687_s24, 4  ;;  %p640_p0 = scmp.ne.s32.totalorder %s836_s1, %s639_s28  ;;  %s22_s25 = int_to_ptr.vmem [resolvable:$true] %s21_s25 }
   0x3   :  { %p643_p1 = scmp.lt.u32.totalorder %s639_s28, %s836_s1 }
   0x5   :  { %p645_p2 = pnand %p643_p1, %p640_p0 }
   0x7   :  { %648 = shalt.err (!%p645_p2)
}
   0x8   :  { %s649_s10 = scalar_lea.vmem %s22_s25, 2048  ;;  %p654_p4 = scmp.lt.s32.totalorder %s22_s25, %s22_s25 }
   0x9   :  { %p650_p3 = scmp.ne.s32.totalorder %s22_s25, %s649_s10  ;;  %p655_p5 = scmp.lt.s32.totalorder %s649_s10, %s649_s10 }
   0xb   :  { %p656_p6 = por %p655_p5, %p654_p4 }
   0xd   :  { %p657_p7 = pnand %p656_p6, %p650_p3 }
   0xf   :  { %660 = shalt.err (!%p657_p7)
}
  0x10   :  { %s688_s11 = smov 64   ;;  %s689_s12 = smov 4  }
  0x11   :  { %27 = dma.hbm_to_vmem [thread:$0]  %s836_s1, 2048, %s22_s25, [#allocation3], %s688_s11, %s688_s11, %s689_s12  }
  0x12   :  { %683 = dma.done.wait [#allocation3], 2048  }
  0x13   :  { %684 = vsyncadd [#allocation3], 4294965248  ;;  %v690_v0 = vmov 0.0   ;;  %v603_v1 = vld [vmem:[#allocation2 + $0x40] sm:$0xff]   ;;  %v605_v3 = vld [vmem:[#allocation2 + $0x48] sm:$0xff]   ;;  %vm691_vm0 = vmmov 0  }
  0x14   :  { %557 = vmatprep.subr.bf16.mxu1 %v690_v0  ;;  %v604_v2 = vld [vmem:[#allocation2] sm:$0xff]   ;;  %517 = vmatprep.subr.bf16.mxu0 %v603_v1  ;;  %v606_v4 = vld [vmem:[#allocation2 + $0x8] sm:$0xff]   ;;  %v607_v5 = vld [vmem:[#allocation2 + $0x50] sm:$0xff]   ;;  %vm463_vm1 = vcmask 517120  }
  0x15   :  { %518 = vmatpush3.bf16.msra.mxu0 %v604_v2  ;;  %v608_v6 = vld [vmem:[#allocation2 + $0x10] sm:$0xff]   ;;  %v609_v7 = vld [vmem:[#allocation2 + $0x58] sm:$0xff]   ;;  %v611_v9 = vld [vmem:[#allocation2 + $0x60] sm:$0xff]   ;;  %573 = vmatprep.mubr.msk.bf16.mxu1 %vm691_vm0, %v690_v0 }
  0x16   :  { %519 = vmatprep.subr.bf16.mxu0 %v605_v3  ;;  %v610_v8 = vld [vmem:[#allocation2 + $0x18] sm:$0xff]   ;;  %v612_v10 = vld [vmem:[#allocation2 + $0x20] sm:$0xff]   ;;  %v613_v11 = vld [vmem:[#allocation2 + $0x68] sm:$0xff]  }
  0x17   :  { %v480_v12 = vld.sshfl [vmem:[%s835_s0] sm:$0x33 pattern:$0x76325410]  ;;  %v614_v15 = vld [vmem:[#allocation2 + $0x28] sm:$0xff]   ;;  %v615_v18 = vld [vmem:[#allocation2 + $0x70] sm:$0xff]  }
  0x18   :  { %v51_v13 = vcombine.high %v480_v12, %v480_v12  ;;  %v619_v14 = vld [vmem:[%s838_s3] sm:$0xff]   ;;  %v620_v17 = vld [vmem:[%s838_s3 + $0x8] sm:$0xff]   ;;  %v616_v19 = vld [vmem:[#allocation2 + $0x30] sm:$0xff]   ;;  %v54_v24 = vpack.c.bf16 %v480_v12, %v480_v12 }
  0x19   :  { %520 = vmatpush3.bf16.msra.mxu0 %v606_v4  ;;  %558 = vmatpush3.bf16.msra.mxu1 %v619_v14  ;;  %v617_v20 = vld [vmem:[#allocation2 + $0x78] sm:$0xff]   ;;  %v621_v21 = vld [vmem:[%s838_s3 + $0x10] sm:$0xff]   ;;  %v623_v25 = vld [vmem:[%s838_s3 + $0x20] sm:$0xff]  }
  0x1a   :  { %521 = vmatprep.subr.bf16.mxu0 %v607_v5  ;;  %v55_v16 = vpack.c.bf16 %v51_v13, %v51_v13  ;;  %559 = vmatprep.subr.bf16.mxu1 %v690_v0  ;;  %v618_v22 = vld [vmem:[#allocation2 + $0x38] sm:$0xff]   ;;  %v624_v26 = vld [vmem:[%s838_s3 + $0x28] sm:$0xff]   ;;  %v625_v27 = vld [vmem:[%s838_s3 + $0x30] sm:$0xff]  }
  0x1b   :  { %v622_v23 = vld [vmem:[%s838_s3 + $0x18] sm:$0xff]   ;;  %v627_v29 = vld [vmem:[%s840_s5] sm:$0xff]   ;;  %v628_v30 = vld [vmem:[%s840_s5 + $0x8] sm:$0xff]  }
  0x1c   :  { %223 = vmatprep.mubr.bf16.mxu0 %v55_v16  ;;  %v626_v28 = vld [vmem:[%s838_s3 + $0x38] sm:$0xff]   ;;  %v629_v31 = vld [vmem:[%s840_s5 + $0x10] sm:$0xff]   ;;  %v631_v33 = vld [vmem:[%s840_s5 + $0x20] sm:$0xff]  }
  0x1d   :  { %522 = vmatpush3.bf16.msra.mxu0 %v608_v6  ;;  %560 = vmatpush3.bf16.msra.mxu1 %v620_v17  ;;  %v630_v32 = vld [vmem:[%s840_s5 + $0x18] sm:$0xff]   ;;  %v632_v34 = vld [vmem:[%s840_s5 + $0x28] sm:$0xff]   ;;  %v481_v36 = vld [vmem:[%s837_s2] ss:$0 sm:$0xff] }
  0x1e   :  { %523 = vmatprep.subr.bf16.mxu0 %v609_v7  ;;  %561 = vmatprep.subr.bf16.mxu1 %v690_v0  ;;  %v633_v44 = vld [vmem:[%s840_s5 + $0x30] sm:$0xff]   ;;  %v634_v45 = vld [vmem:[%s840_s5 + $0x38] sm:$0xff]   ;;  %v498_v46 = vld [vmem:[%s839_s4] ss:$0 sm:$0xff]  ;;  %s692_s4 = smov [#allocation5]  }
  0x1f   :  { %v507_v54 = vld [vmem:[%s841_s6] ss:$0 sm:$0xff]  ;;  %s471_s5 = sshll.u32 %s692_s4, 4  ;;  %s472_s5 = int_to_ptr.vmem [resolvable:$true] %s471_s5 }
  0x20   :  { %s661_s26 = scalar_lea.vmem %s472_s5, 32  ;;  %p666_p9 = scmp.lt.s32.totalorder %s472_s5, %s472_s5 }
  0x21   :  { %524 = vmatpush3.bf16.msra.mxu0 %v610_v8  ;;  %562 = vmatpush3.bf16.msra.mxu1 %v621_v21  ;;  %p662_p8 = scmp.ne.s32.totalorder %s472_s5, %s661_s26  ;;  %p667_p10 = scmp.lt.s32.totalorder %s661_s26, %s661_s26 }
  0x22   :  { %525 = vmatprep.subr.bf16.mxu0 %v611_v9  ;;  %563 = vmatprep.subr.bf16.mxu1 %v690_v0 }
  0x23   :  { %p668_p11 = por %p667_p10, %p666_p9 }
  0x25   :  { %526 = vmatpush3.bf16.msra.mxu0 %v612_v10  ;;  %564 = vmatpush3.bf16.msra.mxu1 %v622_v23  ;;  %p669_p12 = pnand %p668_p11, %p662_p8 }
  0x26   :  { %527 = vmatprep.subr.bf16.mxu0 %v613_v11  ;;  %565 = vmatprep.subr.bf16.mxu1 %v690_v0 }
  0x29   :  { %528 = vmatpush3.bf16.msra.mxu0 %v614_v15  ;;  %566 = vmatpush3.bf16.msra.mxu1 %v623_v25 }
  0x2a   :  { %529 = vmatprep.subr.bf16.mxu0 %v615_v18  ;;  %567 = vmatprep.subr.bf16.mxu1 %v690_v0 }
  0x2d   :  { %530 = vmatpush3.bf16.msra.mxu0 %v616_v19  ;;  %568 = vmatpush3.bf16.msra.mxu1 %v624_v26 }
  0x2e   :  { %531 = vmatprep.subr.bf16.mxu0 %v617_v20  ;;  %569 = vmatprep.subr.bf16.mxu1 %v690_v0 }
  0x31   :  { %532 = vmatpush3.bf16.msra.mxu0 %v618_v22  ;;  %570 = vmatpush3.bf16.msra.mxu1 %v625_v27 }
  0x32   :  { %577 = vmatprep.subr.bf16.mxu0 %v690_v0  ;;  %571 = vmatprep.subr.bf16.mxu1 %v690_v0 }
  0x34   :  { %224 = vmatmul.mubr.bf16.vlgmr.msra.gmra.mrb[0].mxu0 %v54_v24 }
  0x35   :  { %572 = vmatpush3.bf16.msra.mxu1 %v626_v28  ;;  %593 = vmatprep.mubr.msk.bf16.mxu0 %vm691_vm0, %v690_v0 }
  0x36   :  { %578 = vmatpush3.bf16.msra.mxu0 %v627_v29 }
  0x37   :  { %579 = vmatprep.subr.bf16.mxu0 %v690_v0 }
  0x3a   :  { %580 = vmatpush3.bf16.msra.mxu0 %v628_v30 }
  0x3b   :  { %581 = vmatprep.subr.bf16.mxu0 %v690_v0 }
  0x3e   :  { %582 = vmatpush3.bf16.msra.mxu0 %v629_v31 }
  0x3f   :  { %583 = vmatprep.subr.bf16.mxu0 %v690_v0 }
  0x42   :  { %584 = vmatpush3.bf16.msra.mxu0 %v630_v32 }
  0x43   :  { %585 = vmatprep.subr.bf16.mxu0 %v690_v0 }
  0x46   :  { %586 = vmatpush3.bf16.msra.mxu0 %v631_v33 }
  0x47   :  { %587 = vmatprep.subr.bf16.mxu0 %v690_v0 }
  0x4a   :  { %588 = vmatpush3.bf16.msra.mxu0 %v632_v34 }
  0x4b   :  { %589 = vmatprep.subr.bf16.mxu0 %v690_v0 }
  0x4e   :  { %590 = vmatpush3.bf16.msra.mxu0 %v633_v44 }
  0x4f   :  { %591 = vmatprep.subr.bf16.mxu0 %v690_v0 }
  0x52   :  { %592 = vmatpush3.bf16.msra.mxu0 %v634_v45 }
 0x107   :  { %v533_v35 = vpop.f32.mrb[0].mxu0 }
 0x108   :  { %v534_v37 = vpop.f32.mrb[1].mxu0 }
 0x109   :  { %v535_v38 = vadd.f32 %v534_v37, %v533_v35  ;;  %v536_v39 = vpop.f32.mrb[2].mxu0 }
 0x10a   :  { %v537_v40 = vpop.f32.mrb[3].mxu0 }
 0x10b   :  { %v226_v41 = vadd.f32 %v535_v38, %v481_v36 }
 0x10d   :  { %v231_v42 = vmax.f32 %v226_v41, 0.0 }
 0x10f   :  { %v232_v43 = vpack.c.bf16 %v231_v42, %v231_v42 }
 0x111   :  { %574 = vmatmul.mubr.bf16.vlgmr.msra.gmra.mrb[0].mxu1 %v232_v43 }
 0x1e4   :  { %v338_v47 = vpop.f32.mrb[0].mxu1 }
 0x1e5   :  { %v339_v48 = vadd.f32 %v498_v46, %v338_v47  ;;  %v575_v49 = vpop.f32.mrb[1].mxu1 }
 0x1e6   :  { %v341_v50 = vpop.f32.mrb[2].mxu1 }
 0x1e7   :  { %v344_v51 = vmax.f32 %v339_v48, 0.0  ;;  %v576_v52 = vpop.f32.mrb[3].mxu1 }
 0x1e9   :  { %v345_v53 = vpack.c.bf16 %v344_v51, %v344_v51 }
 0x1eb   :  { %594 = vmatmul.mubr.bf16.vlgmr.msra.gmra.mrb[4].mxu0 %v345_v53 }
 0x2be   :  { %v451_v55 = vpop.f32.mrb[4].mxu0 }
 0x2bf   :  { %v452_v56 = vadd.f32 %v507_v54, %v451_v55  ;;  %v595_v57 = vpop.f32.mrb[5].mxu0 }
 0x2c0   :  { %v454_v58 = vpop.f32.mrb[6].mxu0 }
 0x2c1   :  { %v516_v59 = vmul.f32 -1.442695, %v452_v56  ;;  %v596_v60 = vpop.f32.mrb[7].mxu0 }
 0x2c3   :  { %635 = vpow2.f32 %v516_v59 }
 0x2cd   :  { %v636_v61 = vpop.eup %635 }
 0x2ce   :  { %v460_v62 = vadd.f32 1.0, %v636_v61 }
 0x2d0   :  { %637 = vrcp.f32 %v460_v62 }
 0x2da   :  { %v638_v63 = vpop.eup %637 }
 0x2db   :  { %464 = vst.msk [vmem:[#allocation5] sm:$0x3] %vm463_vm1, %v638_v63 }
 0x2dc   :  { %672 = shalt.err (!%p669_p12)
}
 0x2dd   :  { %s673_s28 = scalar_lea.hbm %s842_s7, 32 }
 0x2de   :  { %p674_p13 = scmp.ne.s32.totalorder %s842_s7, %s673_s28  ;;  %p677_p0 = scmp.lt.u32.totalorder %s673_s28, %s842_s7 }
 0x2e0   :  { %p679_p1 = pnand %p677_p0, %p674_p13 }
 0x2e2   :  { %682 = shalt.err (!%p679_p1)
}
 0x2e3   :  { %474 = dma.vmem_to_hbm [thread:$0]  %s472_s5, 32, %s842_s7, [#allocation4]  }
 0x2e4   :  { %685 = dma.done.wait [#allocation4], 32  }
 0x2e5   :  { %686 = vsyncadd [#allocation4], 4294967264 }
 0x2e6   :  { %478 = vsyncpa [#allocation3], 1 }
 0x2e7   :  { %479 = vsyncpa [#allocation4], 1 }

</bundles_post_ra>
